<compile_context>
chip_gen: v5e
topology: v5e:2x2
jax: 0.10.0
libtpu: 0.0.40
codegen_flags: <defaults>
</compile_context>

<pallas_src>
import functools

import jax
import jax.numpy as jnp
from jax import lax
from jax.experimental import pallas as pl
from jax.experimental.pallas import tpu as pltpu

HIDDEN = 128
OUT_W = 128  # lane-dense packed output width (probs in lanes [0:act_dim], value at lane act_dim)


def _round_up(x, m):
    return (x + m - 1) // m * m


def actor_critic_kernel(x_ref, slab1_ref, slab2_ref, out_ref, *, act_dim, hidden):
    # x_ref: (TB, obs_dim + 1)   -- last column is a constant 1 (bias fold)
    # slab1_ref: (obs_dim + 1, 2*hidden) = [W1a | W1c ; b1a | b1c]
    # slab2_ref: (2*hidden + 1, OUT_W)   = block-diag [W2a, W2c] with bias as last row
    x = x_ref[...]

    # ---- fused layer 1 (actor || critic), bias folded into the matmul ----
    h = jnp.dot(x, slab1_ref[...], preferred_element_type=jnp.float32)
    h = jnp.maximum(h, 0.0)                                          # (TB, 2*hidden)

    # ---- fused layer 2 (block-diagonal) ----
    w2 = slab2_ref[0:2 * hidden, :]                                  # (2*hidden, OUT_W), sublane-aligned
    b2 = slab2_ref[2 * hidden:2 * hidden + 1, :]                     # (1, OUT_W)
    z = jnp.dot(h, w2, preferred_element_type=jnp.float32) + b2      # (TB, OUT_W)

    # ---- softmax over the action lanes only (masked) ----
    lane = lax.broadcasted_iota(jnp.int32, z.shape, 1)
    logits = jnp.where(lane < act_dim, z, -jnp.inf)
    m = jnp.max(logits, axis=-1, keepdims=True)
    e = jnp.exp(logits - m)                                          # padded lanes -> 0
    denom = jnp.sum(e, axis=-1, keepdims=True)
    probs = e * pl.reciprocal(denom, approx=False)                   # exact: keeps 1e-5 tolerance

    # ---- single lane-dense store: probs in [0:act_dim], raw value in lane act_dim ----
    out_ref[...] = jnp.where(lane == act_dim, z, probs)


def pack_params(params):
    """Pack the 8 Linear tensors into two contiguous, lane-aligned slabs."""
    hidden = params["w1a"].shape[1]
    act_dim = params["w2a"].shape[1]
    assert act_dim + 1 <= OUT_W

    # slab1: (obs_dim + 1, 2*hidden) = [W1a | W1c] over rows, fused bias as the last row.
    w1 = jnp.concatenate([params["w1a"], params["w1c"]], axis=1)
    b1 = jnp.concatenate([params["b1a"], params["b1c"]], axis=1)
    slab1 = jnp.concatenate([w1, b1], axis=0).astype(jnp.float32)

    # slab2: (2*hidden + 1, OUT_W) block-diagonal layer-2 weights + bias row.
    w2 = jnp.zeros((2 * hidden, OUT_W), jnp.float32)
    w2 = w2.at[0:hidden, 0:act_dim].set(params["w2a"])
    w2 = w2.at[hidden:2 * hidden, act_dim:act_dim + 1].set(params["w2c"])
    b2 = jnp.zeros((1, OUT_W), jnp.float32)
    b2 = b2.at[0, 0:act_dim].set(params["b2a"][0])
    b2 = b2.at[0, act_dim].set(params["b2c"][0, 0])
    slab2 = jnp.concatenate([w2, b2], axis=0)

    return slab1, slab2


def actor_critic_forward(x, slab1, slab2, act_dim):
    """x: (B, obs_dim) f32. slab1/slab2: packed params from pack_params()."""
    B, obs_dim = x.shape
    hidden = slab1.shape[1] // 2
    assert slab1.shape[0] == obs_dim + 1

    # Batch tile: multiple of 8 sublanes; larger tiles amortize the ~0.35us/step overhead.
    tb = 256 if B >= 256 else _round_up(max(B, 1), 8)
    b_pad = _round_up(B, tb)

    # Augment x with a ones column (folds layer-1 bias into the matmul) and pad the batch.
    x_aug = jnp.concatenate([x, jnp.ones((B, 1), x.dtype)], axis=1).astype(jnp.float32)
    if b_pad != B:
        x_aug = jnp.pad(x_aug, ((0, b_pad - B), (0, 0)))

    kernel = functools.partial(actor_critic_kernel, act_dim=act_dim, hidden=hidden)

    out = pl.pallas_call(
        kernel,
        grid=(b_pad // tb,),
        in_specs=[
            pl.BlockSpec((tb, obs_dim + 1), lambda i: (i, 0)),               # x_aug: tiled over batch
            pl.BlockSpec((obs_dim + 1, 2 * hidden), lambda i: (0, 0)),       # slab1: VMEM-resident
            pl.BlockSpec((2 * hidden + 1, OUT_W), lambda i: (0, 0)),         # slab2: VMEM-resident
        ],
        out_specs=pl.BlockSpec((tb, OUT_W), lambda i: (i, 0)),               # single lane-dense slab
        out_shape=jax.ShapeDtypeStruct((b_pad, OUT_W), jnp.float32),
        compiler_params=pltpu.CompilerParams(
            dimension_semantics=("parallel",)),
    )(x_aug, slab1, slab2)

    probs = out[:B, :act_dim]
    value = out[:B, act_dim:act_dim + 1]
    return probs, value


def init_params(key, obs_dim, act_dim, hidden=HIDDEN):
    """Deterministic PyTorch-style uniform(-1/sqrt(fan_in), 1/sqrt(fan_in)) init."""
    ks = jax.random.split(key, 8)

    def lin(kw, kb, fan_in, fan_out):
        bound = 1.0 / jnp.sqrt(jnp.float32(fan_in))
        w = jax.random.uniform(kw, (fan_in, fan_out), jnp.float32, -bound, bound)
        b = jax.random.uniform(kb, (1, fan_out), jnp.float32, -bound, bound)
        return w, b

    w1a, b1a = lin(ks[0], ks[1], obs_dim, hidden)
    w2a, b2a = lin(ks[2], ks[3], hidden, act_dim)
    w1c, b1c = lin(ks[4], ks[5], obs_dim, hidden)
    w2c, b2c = lin(ks[6], ks[7], hidden, 1)
    return dict(w1a=w1a, b1a=b1a, w2a=w2a, b2a=b2a,
                w1c=w1c, b1c=b1c, w2c=w2c, b2c=b2c)


def reference_forward(x, p):
    h_a = jnp.maximum(x @ p["w1a"] + p["b1a"], 0.0)
    probs = jax.nn.softmax(h_a @ p["w2a"] + p["b2a"], axis=-1)
    h_c = jnp.maximum(x @ p["w1c"] + p["b1c"], 0.0)
    value = h_c @ p["w2c"] + p["b2c"]
    return probs, value


if __name__ == "__main__":
    obs_dim, act_dim, hidden = 6, 3, 128   # Acrobot-v1: obs=6, actions=3
    batch = 2

    key = jax.random.PRNGKey(0)
    k_params, k_x = jax.random.split(key)
    params = init_params(k_params, obs_dim, act_dim, hidden)
    x = jax.random.normal(k_x, (batch, obs_dim), jnp.float32)

    slab1, slab2 = pack_params(params)
    probs, value = actor_critic_forward(x, slab1, slab2, act_dim)
    probs, value = jax.block_until_ready((probs, value))

    ref_probs, ref_value = reference_forward(x, params)
    assert probs.shape == (batch, act_dim) and value.shape == (batch, 1)
    assert jnp.allclose(probs, ref_probs, atol=1e-5, rtol=1e-5)
    assert jnp.allclose(value, ref_value, atol=1e-5, rtol=1e-5)
    assert jnp.allclose(jnp.sum(probs, axis=-1), 1.0, atol=1e-5)

    print("KERNEL_OK")
</pallas_src>

<mosaic_0001>
module attributes {stable_mosaic.version = 11 : i64} {
  func.func @actor_critic_kernel(%arg0: i32, %arg1: memref<8x7xf32, #tpu.memory_space<vmem>>, %arg2: memref<7x256xf32, #tpu.memory_space<vmem>>, %arg3: memref<257x128xf32, #tpu.memory_space<vmem>>, %arg4: memref<8x128xf32, #tpu.memory_space<vmem>>) attributes {dimension_semantics = [#tpu.dimension_semantics<parallel>], iteration_bounds = array<i64: 1>, scalar_prefetch = 0 : i64, scratch_operands = 0 : i64, tpu.core_type = #tpu.core_type<tc>, window_params = [{transform_indices = @transform_0, window_bounds = array<i64: 8, 7>}, {pipeline_mode = #tpu.pipeline_mode<synchronous>, transform_indices = @transform_1, window_bounds = array<i64: 7, 256>}, {pipeline_mode = #tpu.pipeline_mode<synchronous>, transform_indices = @transform_2, window_bounds = array<i64: 257, 128>}, {transform_indices = @transform_3, window_bounds = array<i64: 8, 128>}]} {
    %c0 = arith.constant 0 : index
    %c0_0 = arith.constant 0 : index
    %0 = vector.load %arg1[%c0, %c0_0] : memref<8x7xf32, #tpu.memory_space<vmem>>, vector<8x7xf32>
    %c0_1 = arith.constant 0 : index
    %c0_2 = arith.constant 0 : index
    %1 = vector.load %arg2[%c0_1, %c0_2] : memref<7x256xf32, #tpu.memory_space<vmem>>, vector<7x256xf32>
    %cst = arith.constant dense<0.000000e+00> : vector<8x256xf32>
    %2 = tpu.matmul %0, %1, %cst {dimension_numbers = #tpu.dot_dimension_numbers<[1], [0], [0], [1], [0, 0, 1, 1], [], []>} : vector<8x7xf32>, vector<7x256xf32>, vector<8x256xf32> -> vector<8x256xf32>
    %cst_3 = arith.constant 0.000000e+00 : f32
    %3 = vector.broadcast %cst_3 : f32 to vector<8x256xf32>
    %4 = arith.maximumf %2, %3 : vector<8x256xf32>
    %c0_4 = arith.constant 0 : index
    %c0_5 = arith.constant 0 : index
    %5 = vector.load %arg3[%c0_4, %c0_5] : memref<257x128xf32, #tpu.memory_space<vmem>>, vector<256x128xf32>
    %c256 = arith.constant 256 : index
    %c0_6 = arith.constant 0 : index
    %6 = vector.load %arg3[%c256, %c0_6] : memref<257x128xf32, #tpu.memory_space<vmem>>, vector<1x128xf32>
    %cst_7 = arith.constant dense<0.000000e+00> : vector<8x128xf32>
    %7 = tpu.matmul %4, %5, %cst_7 {dimension_numbers = #tpu.dot_dimension_numbers<[1], [0], [0], [1], [0, 0, 1, 1], [], []>} : vector<8x256xf32>, vector<256x128xf32>, vector<8x128xf32> -> vector<8x128xf32>
    %8 = vector.broadcast %6 : vector<1x128xf32> to vector<8x128xf32>
    %9 = arith.addf %7, %8 : vector<8x128xf32>
    %10 = tpu.iota {dimensions = array<i32: 1>} : vector<8x128xi32>
    %c3_i32 = arith.constant 3 : i32
    %11 = vector.broadcast %c3_i32 : i32 to vector<8x128xi32>
    %12 = arith.cmpi slt, %10, %11 : vector<8x128xi32>
    %cst_8 = arith.constant 0xFF800000 : f32
    %13 = vector.broadcast %cst_8 : f32 to vector<8x128xf32>
    %14 = arith.select %12, %9, %13 : vector<8x128xi1>, vector<8x128xf32>
    %cst_9 = arith.constant dense<0xFF800000> : vector<8xf32>
    %15 = vector.multi_reduction <maximumf>, %14, %cst_9 [1] : vector<8x128xf32> to vector<8xf32>
    %16 = vector.shape_cast %15 : vector<8xf32> to vector<8x1xf32>
    %17 = vector.broadcast %16 : vector<8x1xf32> to vector<8x128xf32>
    %18 = arith.subf %14, %17 : vector<8x128xf32>
    %19 = math.exp %18 : vector<8x128xf32>
    %cst_10 = arith.constant dense<0.000000e+00> : vector<8xf32>
    %20 = vector.multi_reduction <add>, %19, %cst_10 [1] : vector<8x128xf32> to vector<8xf32>
    %21 = vector.shape_cast %20 : vector<8xf32> to vector<8x1xf32>
    %22 = tpu.reciprocal %21 : vector<8x1xf32> -> vector<8x1xf32>
    %23 = vector.broadcast %22 : vector<8x1xf32> to vector<8x128xf32>
    %24 = arith.mulf %19, %23 : vector<8x128xf32>
    %c3_i32_11 = arith.constant 3 : i32
    %25 = vector.broadcast %c3_i32_11 : i32 to vector<8x128xi32>
    %26 = arith.cmpi eq, %10, %25 : vector<8x128xi32>
    %27 = arith.select %26, %9, %24 : vector<8x128xi1>, vector<8x128xf32>
    %c0_12 = arith.constant 0 : index
    %c0_13 = arith.constant 0 : index
    %28 = vector.load %arg4[%c0_12, %c0_13] : memref<8x128xf32, #tpu.memory_space<vmem>>, vector<8x128xf32>
    tpu.vector_store %arg4[%c0_12, %c0_13], %27 {strides = array<i32>} : memref<8x128xf32, #tpu.memory_space<vmem>>, vector<8x128xf32>,
    return
  }
  func.func @transform_0(%arg0: i32) -> (i32, i32) {
    %c0_i32 = arith.constant 0 : i32
    %c0_i32_0 = arith.constant 0 : i32
    return %arg0, %c0_i32 : i32, i32
  }
  func.func @transform_1(%arg0: i32) -> (i32, i32) {
    %c0_i32 = arith.constant 0 : i32
    %c0_i32_0 = arith.constant 0 : i32
    %c0_i32_1 = arith.constant 0 : i32
    return %c0_i32, %c0_i32_0 : i32, i32
  }
  func.func @transform_2(%arg0: i32) -> (i32, i32) {
    %c0_i32 = arith.constant 0 : i32
    %c0_i32_0 = arith.constant 0 : i32
    %c0_i32_1 = arith.constant 0 : i32
    return %c0_i32, %c0_i32_0 : i32, i32
  }
  func.func @transform_3(%arg0: i32) -> (i32, i32) {
    %c0_i32 = arith.constant 0 : i32
    %c0_i32_0 = arith.constant 0 : i32
    return %arg0, %c0_i32 : i32, i32
  }
}

</mosaic_0001>

<bundles_post_ra>
// kernel: tpu_custom_call.1
= control target key start
LH: loop header
LB: loop body
LE: loop exit
PB: predicated region body
PF: predicated region fallthrough
CT: control target
= control target key end

     0   :  { %8 = vsyncpa [#allocation3], 0  ;;  %s390_s0 = inlined_call_operand.hbm [shape: f32[8,7], index: 0, kind: input, shape index: {}]   ;;  %s391_s1 = inlined_call_operand.hbm [shape: f32[7,256], index: 1, kind: input, shape index: {}]   ;;  %s392_s2 = inlined_call_operand.hbm [shape: f32[257,128], index: 2, kind: input, shape index: {}]   ;;  %s393_s3 = inlined_call_operand.hbm [shape: f32[8,128], index: 3, kind: output, shape index: {}]  }
   0x1   :  { %9 = vsyncpa [#allocation6], 0  ;;  %s27_s14 = sshll.u32 %s391_s1, 4  ;;  %s28_s14 = int_to_ptr.hbm [resolvable:$true] %s27_s14 }
   0x2   :  { %10 = vsyncpa [#allocation4], 0  ;;  %s352_s15 = smov [#allocation5]   ;;  %s16_s19 = sshll.u32 %s390_s0, 4  ;;  %s17_s19 = int_to_ptr.hbm [resolvable:$true] %s16_s19 }
   0x3   :  { %s29_s16 = sshll.u32 %s352_s15, 4  ;;  %s353_s20 = smov [#allocation2]   ;;  %s30_s16 = int_to_ptr.vmem [resolvable:$true] %s29_s16 }
   0x4   :  { %32 = dma.hbm_to_vmem [thread:$0]  %s28_s14, 256, %s30_s16, [#allocation6]  }
   0x5   :  { %s18_s21 = sshll.u32 %s353_s20, 4  ;;  %s37_s24 = sshll.u32 %s392_s2, 4  ;;  %s19_s21 = int_to_ptr.vmem [resolvable:$true] %s18_s21  ;;  %s38_s24 = int_to_ptr.hbm [resolvable:$true] %s37_s24 }
   0x6   :  { %21 = dma.hbm_to_vmem [thread:$0]  %s17_s19, 128, %s19_s21, [#allocation3]  }
   0x7   :  { %s354_s1 = smov [#allocation7]   ;;  %s355_s26 = smov 128  }
   0x8   :  { %s39_s25 = sshll.u32 %s354_s1, 4  ;;  %s356_s27 = smov 8   ;;  %s40_s25 = int_to_ptr.vmem [resolvable:$true] %s39_s25 }
   0x9   :  { %45 = dma.hbm_to_vmem [thread:$0]  %s38_s24, 4224, %s40_s25, [#allocation6], %s355_s26, %s355_s26, %s356_s27  }
   0xa   :  { %346 = dma.done.wait [#allocation3], 128  }
   0xb   :  { %347 = vsyncadd [#allocation3], 4294967168 }
   0xc   :  { %348 = dma.done.wait [#allocation6], 4480  }
   0xd   :  { %349 = vsyncadd [#allocation6], 4294962816  ;;  %vm65_vm0 = vcmask 1046528   ;;  %vm61_vm1 = vcmask 56320   ;;  %v59_v0 = vld [vmem:[#allocation5] sm:$0x7f]  ;;  %v188_v39 = vlaneseq }
   0xe   :  { %v58_v1 = vld [vmem:[#allocation2] sm:$0xff]  ;;  %v60_v2 = vld [vmem:[#allocation5 + $0x8] sm:$0x7f]  ;;  %235 = vmatpush.msk.msra.mxu0 %vm65_vm0, %v59_v0  ;;  %v128_v5 = vld [vmem:[#allocation7 + $0x70] sm:$0xff]  ;;  %s357_s0 = smov [#allocation8]   ;;  %s224_s30 = sshll.u32 %s393_s3, 4  ;;  %s225_s30 = int_to_ptr.hbm [resolvable:$true] %s224_s30 }
   0xf   :  { %237 = vmatpush.msk.msra.mxu1 %vm65_vm0, %v60_v2  ;;  %v129_v3 = vld [vmem:[#allocation7 + $0x78] sm:$0xff]  ;;  %236 = vmatmul.msk.f32.vlgmr.msra.gmra.mxu0 %vm61_vm1, %v58_v1  ;;  %v144_v6 = vld [vmem:[#allocation7 + $0xf0] sm:$0xff]  ;;  %v127_v7 = vld [vmem:[#allocation7 + $0x68] sm:$0xff]  ;;  %v189_v41 = vand.u32 127, %v188_v39  ;;  %s222_s2 = sshll.u32 %s357_s0, 4  ;;  %s223_s2 = int_to_ptr.vmem [resolvable:$true] %s222_s2 }
  0x10   :  { %v145_v4 = vld [vmem:[#allocation7 + $0xf8] sm:$0xff]  ;;  %238 = vmatmul.msk.f32.vlgmr.msra.gmra.mxu1 %vm61_vm1, %v58_v1  ;;  %148 = vmatpush.msra.mxu2 %v129_v3  ;;  %v143_v8 = vld [vmem:[#allocation7 + $0xe8] sm:$0xff]  ;;  %v126_v9 = vld [vmem:[#allocation7 + $0x60] sm:$0xff] }
  0x11   :  { %168 = vmatpush.msra.mxu3 %v145_v4  ;;  %v142_v10 = vld [vmem:[#allocation7 + $0xe0] sm:$0xff]  ;;  %v125_v11 = vld [vmem:[#allocation7 + $0x58] sm:$0xff]  ;;  %v124_v13 = vld [vmem:[#allocation7 + $0x50] sm:$0xff]  ;;  %vm190_vm2 = vcmp.lt.s32.totalorder %v189_v41, 3  ;;  %vm214_vm7 = vcmp.eq.s32.totalorder %v189_v41, 3 }
  0x12   :  { %149 = vmatpush.msra.mxu2 %v128_v5  ;;  %v141_v12 = vld [vmem:[#allocation7 + $0xd8] sm:$0xff]  ;;  %v140_v14 = vld [vmem:[#allocation7 + $0xd0] sm:$0xff]  ;;  %v123_v15 = vld [vmem:[#allocation7 + $0x48] sm:$0xff] }
  0x13   :  { %169 = vmatpush.msra.mxu3 %v144_v6  ;;  %v139_v16 = vld [vmem:[#allocation7 + $0xc8] sm:$0xff]  ;;  %v122_v17 = vld [vmem:[#allocation7 + $0x40] sm:$0xff]  ;;  %v121_v19 = vld [vmem:[#allocation7 + $0x38] sm:$0xff] }
  0x14   :  { %150 = vmatpush.msra.mxu2 %v127_v7  ;;  %v138_v18 = vld [vmem:[#allocation7 + $0xc0] sm:$0xff]  ;;  %v137_v20 = vld [vmem:[#allocation7 + $0xb8] sm:$0xff]  ;;  %v120_v21 = vld [vmem:[#allocation7 + $0x30] sm:$0xff] }
  0x15   :  { %170 = vmatpush.msra.mxu3 %v143_v8  ;;  %v136_v22 = vld [vmem:[#allocation7 + $0xb0] sm:$0xff]  ;;  %v119_v23 = vld [vmem:[#allocation7 + $0x28] sm:$0xff]  ;;  %v118_v25 = vld [vmem:[#allocation7 + $0x20] sm:$0xff] }
  0x16   :  { %151 = vmatpush.msra.mxu2 %v126_v9  ;;  %v135_v24 = vld [vmem:[#allocation7 + $0xa8] sm:$0xff]  ;;  %v134_v26 = vld [vmem:[#allocation7 + $0xa0] sm:$0xff]  ;;  %v117_v27 = vld [vmem:[#allocation7 + $0x18] sm:$0xff] }
  0x17   :  { %171 = vmatpush.msra.mxu3 %v142_v10  ;;  %v133_v28 = vld [vmem:[#allocation7 + $0x98] sm:$0xff]  ;;  %v116_v29 = vld [vmem:[#allocation7 + $0x10] sm:$0xff]  ;;  %v115_v30 = vld [vmem:[#allocation7 + $0x8] sm:$0xff] }
  0x18   :  { %152 = vmatpush.msra.mxu2 %v125_v11  ;;  %v132_v31 = vld [vmem:[#allocation7 + $0x90] sm:$0xff]  ;;  %v114_v32 = vld [vmem:[#allocation7] sm:$0xff]  ;;  %v131_v33 = vld [vmem:[#allocation7 + $0x88] sm:$0xff] }
  0x19   :  { %172 = vmatpush.msra.mxu3 %v141_v12  ;;  %v130_v34 = vld [vmem:[#allocation7 + $0x80] sm:$0xff] }
  0x1a   :  { %153 = vmatpush.msra.mxu2 %v124_v13  ;;  %v245_v40 = vld [vmem:[#allocation7 + $0x100] ss:$0 sm:$0xff] }
  0x1b   :  { %173 = vmatpush.msra.mxu3 %v140_v14 }
  0x1c   :  { %154 = vmatpush.msra.mxu2 %v123_v15 }
  0x1d   :  { %174 = vmatpush.msra.mxu3 %v139_v16 }
  0x1e   :  { %155 = vmatpush.msra.mxu2 %v122_v17 }
  0x1f   :  { %175 = vmatpush.msra.mxu3 %v138_v18 }
  0x20   :  { %156 = vmatpush.msra.mxu2 %v121_v19 }
  0x21   :  { %176 = vmatpush.msra.mxu3 %v137_v20 }
  0x22   :  { %157 = vmatpush.msra.mxu2 %v120_v21 }
  0x23   :  { %177 = vmatpush.msra.mxu3 %v136_v22 }
  0x24   :  { %158 = vmatpush.msra.mxu2 %v119_v23 }
  0x25   :  { %178 = vmatpush.msra.mxu3 %v135_v24 }
  0x26   :  { %159 = vmatpush.msra.mxu2 %v118_v25 }
  0x27   :  { %179 = vmatpush.msra.mxu3 %v134_v26 }
  0x28   :  { %160 = vmatpush.msra.mxu2 %v117_v27 }
  0x29   :  { %180 = vmatpush.msra.mxu3 %v133_v28 }
  0x2a   :  { %161 = vmatpush.msra.mxu2 %v116_v29 }
  0x2b   :  { %181 = vmatpush.msra.mxu3 %v132_v31 }
  0x2c   :  { %162 = vmatpush.msra.mxu2 %v115_v30 }
  0x2d   :  { %182 = vmatpush.msra.mxu3 %v131_v33 }
  0x2e   :  { %163 = vmatpush.msra.mxu2 %v114_v32 }
  0x2f   :  { %183 = vmatpush.msra.mxu3 %v130_v34 }
  0x8c   :  { %v89_v35 = vpop.f32.mrf.mxu0 }
  0x8d   :  { %v109_v36 = vpop.f32.mrf.mxu1  ;;  %v112_v37 = vmax.f32 %v89_v35, 0.0 }
  0x8e   :  { %v113_v38 = vmax.f32 %v109_v36, 0.0 }
  0x8f   :  { %164 = vmatmul.f32.vlgmr.msra.gmra.mxu2 %v112_v37 }
  0x90   :  { %184 = vmatmul.f32.vlgmr.msra.gmra.mxu3 %v113_v38 }
 0x112   :  { %v165_v42 = vpop.f32.mrf.mxu2 }
 0x113   :  { %v185_v43 = vpop.f32.mrf.mxu3  ;;  %v166_v44 = vadd.f32 %v245_v40, %v165_v42 }
 0x115   :  { %v186_v45 = vadd.f32 %v185_v43, %v166_v44 }
 0x117   :  { %v191_v46 = vsel %vm190_vm2, %v186_v45, -inf }
 0x118   :  { %192 = vmax.xlane.f32.xlu0 %v191_v46 }
 0x18b   :  { %v193_v47 = vpop.xlane.xlu0 %192 }
 0x18c   :  { %v194_v48 = vsub.f32 %v191_v46, %v193_v47 }
 0x18e   :  { %v195_v49 = vmul.f32 1.442695, %v194_v48 }
 0x190   :  { %246 = vpow2.f32 %v195_v49 }
 0x196   :  { %v247_v50 = vpop.eup %246 }
 0x197   :  { %197 = vadd.xlane.f32.xlu0 %v247_v50 }
 0x20a   :  { %v198_v51 = vpop.xlane.xlu0 %197 }
 0x20b   :  { %248 = vrcp.f32 %v198_v51  ;;  %v210_v55 = vand.u32 2147483648, %v198_v51  ;;  %v208_v57 = vand.u32 2147483647, %v198_v51  ;;  %vm204_vm4 = vweird.f32 %v198_v51 }
 0x20d   :  { %v211_v59 = vor.u32 1.1754944e-38, %v210_v55  ;;  %vm209_vm6 = vcmp.eq.f32.partialorder %v208_v57, 8.507059e+37 }
 0x211   :  { %v249_v52 = vpop.eup %248 }
 0x212   :  { %v200_v53 = vmul.f32 %v249_v52, %v198_v51  ;;  %vm205_vm3 = vweird.f32 %v249_v52 }
 0x213   :  { %vm206_vm5 = vmor %vm204_vm4, %vm205_vm3 }
 0x214   :  { %v201_v54 = vsub.f32 1.0, %v200_v53 }
 0x216   :  { %v202_v56 = vmul.f32 %v249_v52, %v201_v54 }
 0x218   :  { %v203_v58 = vadd.f32 %v249_v52, %v202_v56 }
 0x21a   :  { %v207_v60 = vsel %vm206_vm5, %v249_v52, %v203_v58 }
 0x21b   :  { %v212_v61 = vsel %vm209_vm6, %v211_v59, %v207_v60 }
 0x21c   :  { %v213_v62 = vmul.f32 %v247_v50, %v212_v61 }
 0x21e   :  { %v215_v63 = vsel %vm214_vm7, %v186_v45, %v213_v62 }
 0x21f   :  { %216 = vst [vmem:[#allocation8] sm:$0xff] %v215_v63 }
 0x220   :  { %227 = dma.vmem_to_hbm [thread:$0]  %s223_s2, 128, %s225_s30, [#allocation4]  }
 0x221   :  { %350 = dma.done.wait [#allocation4], 128  }
 0x222   :  { %351 = vsyncadd [#allocation4], 4294967168 }
 0x223   :  { %232 = vsyncpa [#allocation3], 1 }
 0x224   :  { %233 = vsyncpa [#allocation6], 1 }
 0x225   :  { %234 = vsyncpa [#allocation4], 1 }

</bundles_post_ra>
